<compile_context>
chip_gen: v5e
topology: v5e:2x2
jax: 0.10.0
libtpu: 0.0.40
codegen_flags: <defaults>
</compile_context>

<pallas_src>
import numpy as np
import jax
import jax.numpy as jnp
from jax.experimental import pallas as pl
from jax.experimental.pallas import tpu as pltpu


# ----------------------------- Pallas kernels --------------------------------
def _residual_kernel(bw_ref, inty_ref, o_ref):
    # out = clamp(inty, -1, 1) * bandwidth          (default is identically zero)
    o_ref[...] = jnp.clip(inty_ref[...], -1.0, 1.0) * bw_ref[0, 0]


def _residual_add_kernel(bw_ref, inty_ref, default_ref, o_ref):
    # out = default + clamp(inty, -1, 1) * bandwidth   (general fallback path)
    o_ref[...] = default_ref[...] + jnp.clip(inty_ref[...], -1.0, 1.0) * bw_ref[0, 0]


def _full_block_spec(shape):
    # Single no-grid, whole-array VMEM block.  block_shape == full array dims,
    # so the (8,128) divisibility rule is waived and no padding is needed.
    return pl.BlockSpec(shape, lambda: (0,) * len(shape))


def _smem_scalar_spec():
    # (1,1) scalar lives in SMEM; read with ref[0, 0] inside the kernel.
    return pl.BlockSpec(memory_space=pltpu.MemorySpace.SMEM)


def intensities_residual(inty: jax.Array, bandwidth) -> jax.Array:
    """clamp(inty, -1, 1) * bandwidth   (used when `default` is known to be zero)."""
    n = inty.shape[-1]
    bw = jnp.asarray(bandwidth, dtype=inty.dtype).reshape(1, 1)
    return pl.pallas_call(
        _residual_kernel,
        out_shape=jax.ShapeDtypeStruct(inty.shape, inty.dtype),
        in_specs=[_smem_scalar_spec(), _full_block_spec(inty.shape)],
        out_specs=_full_block_spec(inty.shape),
        cost_estimate=pl.CostEstimate(
            flops=3 * n, transcendentals=0,
            bytes_accessed=2 * n * inty.dtype.itemsize),
    )(bw, inty)


def intensities_forward(inty: jax.Array, default: jax.Array, bandwidth) -> jax.Array:
    """General path: default + clamp(inty, -1, 1) * bandwidth."""
    assert inty.shape == default.shape, "inty/default shape mismatch"
    assert inty.dtype == default.dtype, "inty/default dtype mismatch"
    n = inty.shape[-1]
    bw = jnp.asarray(bandwidth, dtype=inty.dtype).reshape(1, 1)
    return pl.pallas_call(
        _residual_add_kernel,
        out_shape=jax.ShapeDtypeStruct(inty.shape, inty.dtype),
        in_specs=[_smem_scalar_spec(),
                  _full_block_spec(inty.shape),
                  _full_block_spec(default.shape)],
        out_specs=_full_block_spec(inty.shape),
        cost_estimate=pl.CostEstimate(
            flops=4 * n, transcendentals=0,
            bytes_accessed=3 * n * inty.dtype.itemsize),
    )(bw, inty, default)


# ------------------------------ Module port ----------------------------------
class Config:
    """Minimal stand-in for renderer.Config: just the fields Intensities uses."""

    def __init__(self, num_sdfs: int, intensities: np.ndarray):
        assert isinstance(intensities, np.ndarray) and intensities.ndim == 1
        self.NUM_SDFS = int(num_sdfs)
        self.INTENSITIES = intensities


class Intensities:
    """JAX/Pallas port of renderer.Intensities (forward semantics preserved)."""

    def __init__(self, config, learnable=False, init=np.array([0.3, 0.5]), bandwidth=0.05):
        assert isinstance(config, Config), 'config must be an instance of class Config'
        assert isinstance(learnable, bool), 'learnable must be a boolean'
        assert isinstance(init, np.ndarray) and len(init.shape) == 1, 'init must be a 1D array of intensities'
        assert isinstance(bandwidth, float) and bandwidth > 0 and (bandwidth < 1), \
            'bandwidth must be a float between 0 and 1'
        intens = jnp.asarray(config.INTENSITIES, dtype=jnp.float32).reshape(1, 1, -1)
        if learnable:
            assert config.NUM_SDFS == init.shape[0], 'init must exactly the same intensities as number of sdfs'
            # TODO(synk): nn.Parameter / autograd registration has no Pallas equivalent;
            # the learnable intensity vector is held as a plain jnp array here.
            self.inty = jnp.asarray(init, dtype=jnp.float32).reshape(1, 1, -1)
            self.default = 0.0 * intens
            self._inty_is_zero = False
            self._default_is_zero = True
        else:
            self.inty = 0.0 * intens
            self.default = intens
            self._inty_is_zero = True
            self._default_is_zero = False
        self.config = config
        self.bandwidth = float(bandwidth)
        # Built once; forward never re-materializes the scalar.
        self._bw = jnp.full((1, 1), self.bandwidth, dtype=jnp.float32)

    def forward(self):
        if self._inty_is_zero:
            # clamp(0, -1, 1) * bandwidth == 0, so the output is exactly `default`.
            # No kernel / custom-call launch at all for the inference config.
            return self.default
        if self._default_is_zero:
            # Learnable config: default == 0 -> single-input kernel.
            return intensities_residual(self.inty, self._bw)
        # Not reachable via this constructor, kept for generality.
        return intensities_forward(self.inty, self.default, self._bw)

    def __call__(self):
        return self.forward()


# --------------------------------- Main ---------------------------------------
if __name__ == "__main__":
    key = jax.random.PRNGKey(0)
    k_int, k_init = jax.random.split(key)

    num_sdfs = 256
    intensities_np = np.asarray(jax.random.uniform(k_int, (num_sdfs,), dtype=jnp.float32))
    init_np = np.asarray(
        jax.random.uniform(k_init, (num_sdfs,), dtype=jnp.float32, minval=-2.0, maxval=2.0)
    )
    cfg = Config(num_sdfs, intensities_np)
    bandwidth = 0.05

    ok = True
    last_mod = None
    for learnable, init in ((False, np.array([0.3, 0.5])), (True, init_np)):
        mod = Intensities(cfg, learnable=learnable, init=init, bandwidth=bandwidth)
        out = mod()
        jax.block_until_ready(out)

        # Pure-JAX reference of the PyTorch forward.
        ref = mod.default + jnp.clip(mod.inty, -1.0, 1.0) * bandwidth
        ok &= out.shape == (1, 1, num_sdfs)
        ok &= out.dtype == ref.dtype
        ok &= bool(jnp.allclose(out, ref, rtol=1e-6, atol=1e-6))
        last_mod = mod

    # Also exercise the general two-input fallback kernel once for coverage.
    gen = intensities_forward(last_mod.inty, last_mod.default, last_mod._bw)
    jax.block_until_ready(gen)
    gen_ref = last_mod.default + jnp.clip(last_mod.inty, -1.0, 1.0) * bandwidth
    ok &= bool(jnp.allclose(gen, gen_ref, rtol=1e-6, atol=1e-6))

    assert ok, "Pallas Intensities forward mismatch vs reference"
    print("KERNEL_OK")
</pallas_src>

<mosaic_0001>
module attributes {stable_mosaic.version = 11 : i64} {
  func.func @_residual_kernel(%arg0: memref<1x1xf32, #tpu.memory_space<smem>>, %arg1: memref<1x1x256xf32, #tpu.memory_space<vmem>>, %arg2: memref<1x1x256xf32, #tpu.memory_space<vmem>>) attributes {dimension_semantics = [], scalar_prefetch = 0 : i64, scratch_operands = 0 : i64, tpu.core_type = #tpu.core_type<tc>} {
    %c0 = arith.constant 0 : index
    %c0_0 = arith.constant 0 : index
    %c0_1 = arith.constant 0 : index
    %0 = vector.load %arg1[%c0, %c0_0, %c0_1] : memref<1x1x256xf32, #tpu.memory_space<vmem>>, vector<1x1x256xf32>
    %cst = arith.constant -1.000000e+00 : f32
    %cst_2 = arith.constant 1.000000e+00 : f32
    %1 = vector.broadcast %cst : f32 to vector<1x1x256xf32>
    %2 = arith.maximumf %1, %0 : vector<1x1x256xf32>
    %3 = vector.broadcast %cst_2 : f32 to vector<1x1x256xf32>
    %4 = arith.minimumf %3, %2 : vector<1x1x256xf32>
    %c0_3 = arith.constant 0 : index
    %c0_4 = arith.constant 0 : index
    %5 = memref.load %arg0[%c0_3, %c0_4] : memref<1x1xf32, #tpu.memory_space<smem>>
    %6 = vector.broadcast %5 : f32 to vector<1x1x256xf32>
    %7 = arith.mulf %4, %6 : vector<1x1x256xf32>
    %c0_5 = arith.constant 0 : index
    %c0_6 = arith.constant 0 : index
    %c0_7 = arith.constant 0 : index
    %8 = vector.load %arg2[%c0_5, %c0_6, %c0_7] : memref<1x1x256xf32, #tpu.memory_space<vmem>>, vector<1x1x256xf32>
    tpu.vector_store %arg2[%c0_5, %c0_6, %c0_7], %7 {strides = array<i32>} : memref<1x1x256xf32, #tpu.memory_space<vmem>>, vector<1x1x256xf32>,
    return
  }
}

</mosaic_0001>

<bundles_post_ra>
// kernel: tpu_custom_call.1
= control target key start
LH: loop header
LB: loop body
LE: loop exit
PB: predicated region body
PF: predicated region fallthrough
CT: control target
= control target key end

     0   :  { %v19_v2 = vlaneseq  ;;  %s93_s0 = inlined_call_operand.<no memory space> [shape: f32[1,1], index: 0, kind: input, shape index: {}]   ;;  %s94_s1 = inlined_call_operand.vmem [shape: f32[1,1,256], index: 1, kind: input, shape index: {}]   ;;  %s95_s2 = inlined_call_operand.hbm [shape: f32[1,1,256], index: 2, kind: output, shape index: {}]  }
   0x1   :  { %v13_v0 = vld [vmem:[%s94_s1] sm:$0x3]  ;;  %v17_v1 = vstv %s93_s0 }
   0x2   :  { %8 = vsyncpa [#allocation4], 0  ;;  %s31_s15 = sshll.u32 %s95_s2, 4  ;;  %v40_v3 = vclamps-f32 %v13_v0, 1.0  ;;  %s68_s16 = smov [#allocation3]   ;;  %vm21_vm0 = vcmp.lt.s32.totalorder %v19_v2, 256  ;;  %s32_s15 = int_to_ptr.hbm [resolvable:$true] %s31_s15 }
   0x3   :  { %s29_s17 = sshll.u32 %s68_s16, 4  ;;  %s30_s17 = int_to_ptr.vmem [resolvable:$true] %s29_s17 }
   0x4   :  { %v18_v4 = vmul.f32 %v40_v3, %v17_v1 }
   0x6   :  { %23 = vst.msk [vmem:[#allocation3] sm:$0x3] %vm21_vm0, %v18_v4 }
   0x7   :  { %34 = dma.vmem_to_hbm [thread:$0]  %s30_s17, 32, %s32_s15, [#allocation4]  }
   0x8   :  { %66 = dma.done.wait [#allocation4], 32  }
   0x9   :  { %67 = vsyncadd [#allocation4], 4294967264 }
   0xa   :  { %39 = vsyncpa [#allocation4], 1 }

</bundles_post_ra>
